<compile_context>
chip_gen: v7x
topology: tpu7x:2x2x1
jax: 0.10.0
libtpu: 0.0.40
codegen_flags: <defaults>
</compile_context>

<pallas_src>
import jax
import jax.numpy as jnp
from jax.experimental import pallas as pl
from jax.experimental.pallas import tpu as pltpu


def _round_up(x: int, m: int) -> int:
    return (x + m - 1) // m * m


def _bce_partial_sum(x, y, chunk_idx, b_true):
    """Stable BCE-with-logits on lane-dense (1, tb) tensors, masked to the
    true batch size, reduced to a (1, 1) partial sum.

      per = max(x, 0) - x*y + log1p(exp(-|x|))   (matches BCEWithLogitsLoss)
    """
    per = jnp.maximum(x, 0.0) - x * y + jnp.log1p(jnp.exp(-jnp.abs(x)))
    tb = x.shape[-1]
    idx = chunk_idx * tb + jax.lax.broadcasted_iota(jnp.int32, x.shape, 1)
    valid = (idx < b_true).astype(jnp.float32)
    return jnp.sum(per * valid, keepdims=True)          # (1, 1)


def _skipgram_fused_kernel(b_ref, win_t_ref, wout_t_ref,
                           c_ref, t_ref, lbl_ref, out_ref):
    """Fused-gather path: tables resident in VMEM, gather-as-matmul on MXU."""
    i = pl.program_id(0)
    tb = c_ref.shape[1]
    V = win_t_ref.shape[1]

    c = c_ref[...]                                       # (1, tb) int32
    t = t_ref[...]                                       # (1, tb) int32

    # One-hot selectors with the sample axis on lanes: (V, tb).
    vocab = jax.lax.broadcasted_iota(jnp.int32, (V, tb), 0)
    sel_c = (vocab == c).astype(jnp.float32)
    sel_t = (vocab == t).astype(jnp.float32)

    # Gather-as-matmul: (E, V) @ (V, tb) -> (E, tb).  One-hot entries are
    # exactly 0/1, so this reproduces the f32 embedding rows exactly.
    ce_t = jnp.dot(win_t_ref[...], sel_c, preferred_element_type=jnp.float32)
    te_t = jnp.dot(wout_t_ref[...], sel_t, preferred_element_type=jnp.float32)

    # word_sim: reduce over E (sublanes) -> lane-dense (1, tb).
    x = jnp.sum(ce_t * te_t, axis=0, keepdims=True)
    out_ref[...] = _bce_partial_sum(x, lbl_ref[...], i, b_ref[0])


def _skipgram_pregathered_kernel(b_ref, ce_t_ref, te_t_ref, lbl_ref, out_ref):
    """Fallback path: pre-gathered transposed (E, tb) slabs streamed from HBM."""
    i = pl.program_id(0)
    ce_t = ce_t_ref[...].astype(jnp.float32)             # (E, tb)
    te_t = te_t_ref[...].astype(jnp.float32)
    x = jnp.sum(ce_t * te_t, axis=0, keepdims=True)      # (1, tb)
    out_ref[...] = _bce_partial_sum(x, lbl_ref[...], i, b_ref[0])


def skipgram_loss(w_in, w_out, center_ids, target_ids, label, *,
                  tb: int = 2048,
                  max_resident_table_bytes: int = 8 * 1024 * 1024):
    """Scalar BCE-with-logits loss, same semantics as SkipGram.forward."""
    B = center_ids.shape[0]
    V, E = w_in.shape

    fused = 2 * V * E * 4 <= max_resident_table_bytes

    # ---- chunking: tb is a multiple of 128 (lane-dense), and we aim for
    # >= 2 chunks on big batches so the "parallel" grid axis can use both
    # TensorCores on v7x.
    b128 = _round_up(max(B, 1), 128)
    tb = max(128, min(_round_up(tb, 128), b128))
    if b128 >= 256 and b128 // tb < 2:
        tb = _round_up((b128 + 1) // 2, 128)
    if not fused:
        # Bound streamed-slab VMEM: 2 slabs x 2 pipeline buffers x E*tb*4 B.
        tb_cap = max(128, (8 * 1024 * 1024 // (16 * E * 4)) // 128 * 128)
        tb = min(tb, tb_cap)
    b_pad = _round_up(b128, tb)
    n_chunks = b_pad // tb
    pad = b_pad - B

    # Padded ids gather row 0; padded rows are zeroed by the in-kernel mask
    # (idx < B), so they contribute exactly 0 to the loss.
    c_ids = jnp.pad(center_ids.astype(jnp.int32), (0, pad))
    t_ids = jnp.pad(target_ids.astype(jnp.int32), (0, pad))
    c3d = c_ids.reshape(n_chunks, 1, tb)
    t3d = t_ids.reshape(n_chunks, 1, tb)
    lbl3d = jnp.pad(label.astype(jnp.float32), (0, pad)).reshape(n_chunks, 1, tb)
    b_true = jnp.array([B], dtype=jnp.int32)             # scalar prefetch (SMEM)

    params = pltpu.CompilerParams(dimension_semantics=("parallel",))
    out_shape = jax.ShapeDtypeStruct((n_chunks, 1, 1), jnp.float32)
    chunk_spec = lambda: pl.BlockSpec((None, 1, tb), lambda i, b: (i, 0, 0))
    out_spec = pl.BlockSpec((None, 1, 1), lambda i, b: (i, 0, 0))

    if fused:
        cost = pl.CostEstimate(
            flops=4 * b_pad * V * E + 4 * b_pad * E,
            transcendentals=2 * b_pad,
            bytes_accessed=2 * V * E * 4 + 3 * b_pad * 4 + n_chunks * 4,
        )
        grid_spec = pltpu.PrefetchScalarGridSpec(
            num_scalar_prefetch=1,
            grid=(n_chunks,),
            in_specs=[
                pl.BlockSpec((E, V), lambda i, b: (0, 0)),   # w_in^T  (resident)
                pl.BlockSpec((E, V), lambda i, b: (0, 0)),   # w_out^T (resident)
                chunk_spec(),                                # center ids
                chunk_spec(),                                # target ids
                chunk_spec(),                                # labels
            ],
            out_specs=out_spec,
        )
        partials = pl.pallas_call(
            _skipgram_fused_kernel,
            out_shape=out_shape,
            grid_spec=grid_spec,
            compiler_params=params,
            cost_estimate=cost,
        )(b_true, w_in.T, w_out.T, c3d, t3d, lbl3d)
    else:
        # Vocab too large for VMEM-resident tables: pre-gather transposed
        # (E, b_pad) slabs and stream lane-dense (E, tb) tiles.
        # TODO(synk): optionally stream these slabs in bfloat16 (halves HBM
        # bytes) when ~1e-3 loss tolerance is acceptable; kept f32 here for
        # exact parity with the reference.
        ce_t = jnp.take(w_in, c_ids, axis=0).T               # (E, b_pad)
        te_t = jnp.take(w_out, t_ids, axis=0).T              # (E, b_pad)
        cost = pl.CostEstimate(
            flops=4 * b_pad * E,
            transcendentals=2 * b_pad,
            bytes_accessed=2 * b_pad * E * 4 + b_pad * 4 + n_chunks * 4,
        )
        grid_spec = pltpu.PrefetchScalarGridSpec(
            num_scalar_prefetch=1,
            grid=(n_chunks,),
            in_specs=[
                pl.BlockSpec((E, tb), lambda i, b: (0, i)),  # center slab (transposed)
                pl.BlockSpec((E, tb), lambda i, b: (0, i)),  # target slab (transposed)
                chunk_spec(),                                # labels
            ],
            out_specs=out_spec,
        )
        partials = pl.pallas_call(
            _skipgram_pregathered_kernel,
            out_shape=out_shape,
            grid_spec=grid_spec,
            compiler_params=params,
            cost_estimate=cost,
        )(b_true, ce_t, te_t, lbl3d)

    # Final mean over the true (unpadded) batch size.
    return jnp.sum(partials) / B


def _reference_loss(w_in, w_out, center_ids, target_ids, label):
    """Pure-JAX reference mirroring the PyTorch module."""
    ce = w_in[center_ids]                      # [B, E]
    te = w_out[target_ids]                     # [B, E]
    x = jnp.sum(ce * te, axis=-1)              # [B]
    y = label.astype(jnp.float32)
    per = jnp.maximum(x, 0.0) - x * y + jnp.log1p(jnp.exp(-jnp.abs(x)))
    return jnp.mean(per)


if __name__ == "__main__":
    VOCAB = 64
    EMBED = 128
    INIT_RANGE = 0.1

    key = jax.random.PRNGKey(0)
    k_win, k_wout = jax.random.split(key, 2)

    # uniform(-init_range, init_range), like torch FloatTensor(...).uniform_()
    w_in = jax.random.uniform(k_win, (VOCAB, EMBED), jnp.float32,
                              minval=-INIT_RANGE, maxval=INIT_RANGE)
    w_out = jax.random.uniform(k_wout, (VOCAB, EMBED), jnp.float32,
                               minval=-INIT_RANGE, maxval=INIT_RANGE)

    def check(B, seed, **kw):
        kc, kt, kl = jax.random.split(jax.random.PRNGKey(seed), 3)
        c = jax.random.randint(kc, (B,), 0, VOCAB, dtype=jnp.int32)
        t = jax.random.randint(kt, (B,), 0, VOCAB, dtype=jnp.int32)
        l = jax.random.randint(kl, (B,), 0, 2, dtype=jnp.int32)
        got = jax.block_until_ready(skipgram_loss(w_in, w_out, c, t, l, **kw))
        ref = jax.block_until_ready(_reference_loss(w_in, w_out, c, t, l))
        assert jnp.allclose(got, ref, rtol=1e-5, atol=1e-5), (B, kw, got, ref)

    check(8, 0)                               # tiny aligned batch (fused path)
    check(11, 1)                              # ragged batch -> padding mask (fused)
    check(300, 2)                             # multi-chunk "parallel" grid (fused)
    check(11, 1, max_resident_table_bytes=0)  # pre-gather fallback path

    print("KERNEL_OK")
</pallas_src>

<mosaic_0001>
module attributes {stable_mosaic.version = 11 : i64} {
  func.func @_skipgram_fused_kernel(%arg0: i32, %arg1: memref<1xi32, #tpu.memory_space<smem>>, %arg2: memref<128x64xf32, #tpu.memory_space<vmem>>, %arg3: memref<128x64xf32, #tpu.memory_space<vmem>>, %arg4: memref<1x1x128xi32, #tpu.memory_space<vmem>>, %arg5: memref<1x1x128xi32, #tpu.memory_space<vmem>>, %arg6: memref<1x1x128xf32, #tpu.memory_space<vmem>>, %arg7: memref<1x1x1xf32, #tpu.memory_space<vmem>>) attributes {dimension_semantics = [#tpu.dimension_semantics<parallel>], iteration_bounds = array<i64: 1>, scalar_prefetch = 1 : i64, scratch_operands = 0 : i64, tpu.core_type = #tpu.core_type<tc>, window_params = [{pipeline_mode = #tpu.pipeline_mode<synchronous>, transform_indices = @transform_0, window_bounds = array<i64: 128, 64>}, {pipeline_mode = #tpu.pipeline_mode<synchronous>, transform_indices = @transform_1, window_bounds = array<i64: 128, 64>}, {transform_indices = @transform_2, window_bounds = array<i64: 1, 1, 128>}, {transform_indices = @transform_3, window_bounds = array<i64: 1, 1, 128>}, {transform_indices = @transform_4, window_bounds = array<i64: 1, 1, 128>}, {transform_indices = @transform_5, window_bounds = array<i64: 1, 1, 1>}]} {
    %c0 = arith.constant 0 : index
    %c0_0 = arith.constant 0 : index
    %c0_1 = arith.constant 0 : index
    %0 = vector.load %arg4[%c0, %c0_0, %c0_1] : memref<1x1x128xi32, #tpu.memory_space<vmem>>, vector<1x1x128xi32>
    %1 = vector.shape_cast %0 : vector<1x1x128xi32> to vector<1x128xi32>
    %c0_2 = arith.constant 0 : index
    %c0_3 = arith.constant 0 : index
    %c0_4 = arith.constant 0 : index
    %2 = vector.load %arg5[%c0_2, %c0_3, %c0_4] : memref<1x1x128xi32, #tpu.memory_space<vmem>>, vector<1x1x128xi32>
    %3 = vector.shape_cast %2 : vector<1x1x128xi32> to vector<1x128xi32>
    %4 = tpu.iota {dimensions = array<i32: 0>} : vector<64x128xi32>
    %5 = vector.broadcast %1 : vector<1x128xi32> to vector<64x128xi32>
    %6 = arith.cmpi eq, %4, %5 : vector<64x128xi32>
    %7 = arith.extui %6 : vector<64x128xi1> to vector<64x128xi32>
    %8 = arith.sitofp %7 : vector<64x128xi32> to vector<64x128xf32>
    %9 = vector.broadcast %3 : vector<1x128xi32> to vector<64x128xi32>
    %10 = arith.cmpi eq, %4, %9 : vector<64x128xi32>
    %11 = arith.extui %10 : vector<64x128xi1> to vector<64x128xi32>
    %12 = arith.sitofp %11 : vector<64x128xi32> to vector<64x128xf32>
    %c0_5 = arith.constant 0 : index
    %c0_6 = arith.constant 0 : index
    %13 = vector.load %arg2[%c0_5, %c0_6] : memref<128x64xf32, #tpu.memory_space<vmem>>, vector<128x64xf32>
    %cst = arith.constant dense<0.000000e+00> : vector<128x128xf32>
    %14 = tpu.matmul %13, %8, %cst {dimension_numbers = #tpu.dot_dimension_numbers<[1], [0], [0], [1], [0, 0, 1, 1], [], []>} : vector<128x64xf32>, vector<64x128xf32>, vector<128x128xf32> -> vector<128x128xf32>
    %c0_7 = arith.constant 0 : index
    %c0_8 = arith.constant 0 : index
    %15 = vector.load %arg3[%c0_7, %c0_8] : memref<128x64xf32, #tpu.memory_space<vmem>>, vector<128x64xf32>
    %cst_9 = arith.constant dense<0.000000e+00> : vector<128x128xf32>
    %16 = tpu.matmul %15, %12, %cst_9 {dimension_numbers = #tpu.dot_dimension_numbers<[1], [0], [0], [1], [0, 0, 1, 1], [], []>} : vector<128x64xf32>, vector<64x128xf32>, vector<128x128xf32> -> vector<128x128xf32>
    %17 = arith.mulf %14, %16 : vector<128x128xf32>
    %cst_10 = arith.constant dense<0.000000e+00> : vector<128xf32>
    %18 = vector.multi_reduction <add>, %17, %cst_10 [0] : vector<128x128xf32> to vector<128xf32>
    %19 = vector.shape_cast %18 : vector<128xf32> to vector<1x128xf32>
    %c0_11 = arith.constant 0 : index
    %c0_12 = arith.constant 0 : index
    %c0_13 = arith.constant 0 : index
    %20 = vector.load %arg6[%c0_11, %c0_12, %c0_13] : memref<1x1x128xf32, #tpu.memory_space<vmem>>, vector<1x1x128xf32>
    %21 = vector.shape_cast %20 : vector<1x1x128xf32> to vector<1x128xf32>
    %c0_14 = arith.constant 0 : index
    %22 = memref.load %arg1[%c0_14] : memref<1xi32, #tpu.memory_space<smem>>
    %cst_15 = arith.constant 0.000000e+00 : f32
    %23 = vector.broadcast %cst_15 : f32 to vector<1x128xf32>
    %24 = arith.maximumf %19, %23 : vector<1x128xf32>
    %25 = arith.mulf %19, %21 : vector<1x128xf32>
    %26 = arith.subf %24, %25 : vector<1x128xf32>
    %27 = math.absf %19 : vector<1x128xf32>
    %cst_16 = arith.constant 0.000000e+00 : f32
    %28 = vector.broadcast %cst_16 : f32 to vector<1x128xf32>
    %29 = arith.subf %28, %27 : vector<1x128xf32>
    %30 = math.exp %29 : vector<1x128xf32>
    %31 = math.log1p %30 : vector<1x128xf32>
    %32 = arith.addf %26, %31 : vector<1x128xf32>
    %c128_i32 = arith.constant 128 : i32
    %33 = arith.muli %arg0, %c128_i32 : i32
    %34 = tpu.iota {dimensions = array<i32: 1>} : vector<1x128xi32>
    %35 = vector.broadcast %33 : i32 to vector<1x128xi32>
    %36 = arith.addi %35, %34 : vector<1x128xi32>
    %37 = vector.broadcast %22 : i32 to vector<1x128xi32>
    %38 = arith.cmpi slt, %36, %37 : vector<1x128xi32>
    %39 = arith.extui %38 : vector<1x128xi1> to vector<1x128xi32>
    %40 = arith.sitofp %39 : vector<1x128xi32> to vector<1x128xf32>
    %41 = arith.mulf %32, %40 : vector<1x128xf32>
    %42 = vector.shape_cast %41 : vector<1x128xf32> to vector<1x1x128xf32>
    %cst_17 = arith.constant dense<0.000000e+00> : vector<1xf32>
    %43 = vector.multi_reduction <add>, %42, %cst_17 [1, 2] : vector<1x1x128xf32> to vector<1xf32>
    %44 = vector.shape_cast %43 : vector<1xf32> to vector<1x1x1xf32>
    %45 = vector.extract %44[0, 0, 0] : f32 from vector<1x1x1xf32>
    %46 = vector.broadcast %45 : f32 to vector<1x1xf32>
    %c0_18 = arith.constant 0 : index
    %c0_19 = arith.constant 0 : index
    %c0_20 = arith.constant 0 : index
    %47 = vector.load %arg7[%c0_18, %c0_19, %c0_20] : memref<1x1x1xf32, #tpu.memory_space<vmem>>, vector<1x1x1xf32>
    %48 = vector.shape_cast %47 : vector<1x1x1xf32> to vector<1x1xf32>
    %49 = vector.shape_cast %46 : vector<1x1xf32> to vector<1x1x1xf32>
    tpu.vector_store %arg7[%c0_18, %c0_19, %c0_20], %49 {strides = array<i32>} : memref<1x1x1xf32, #tpu.memory_space<vmem>>, vector<1x1x1xf32>,
    return
  }
  func.func @transform_0(%arg0: i32, %arg1: memref<1xi32, #tpu.memory_space<smem>>) -> (i32, i32) {
    %c0_i32 = arith.constant 0 : i32
    %c0_i32_0 = arith.constant 0 : i32
    %c0_i32_1 = arith.constant 0 : i32
    return %c0_i32, %c0_i32_0 : i32, i32
  }
  func.func @transform_1(%arg0: i32, %arg1: memref<1xi32, #tpu.memory_space<smem>>) -> (i32, i32) {
    %c0_i32 = arith.constant 0 : i32
    %c0_i32_0 = arith.constant 0 : i32
    %c0_i32_1 = arith.constant 0 : i32
    return %c0_i32, %c0_i32_0 : i32, i32
  }
  func.func @transform_2(%arg0: i32, %arg1: memref<1xi32, #tpu.memory_space<smem>>) -> (i32, i32, i32) {
    %c0_i32 = arith.constant 0 : i32
    %c0_i32_0 = arith.constant 0 : i32
    %c0_i32_1 = arith.constant 0 : i32
    return %arg0, %c0_i32, %c0_i32_0 : i32, i32, i32
  }
  func.func @transform_3(%arg0: i32, %arg1: memref<1xi32, #tpu.memory_space<smem>>) -> (i32, i32, i32) {
    %c0_i32 = arith.constant 0 : i32
    %c0_i32_0 = arith.constant 0 : i32
    %c0_i32_1 = arith.constant 0 : i32
    return %arg0, %c0_i32, %c0_i32_0 : i32, i32, i32
  }
  func.func @transform_4(%arg0: i32, %arg1: memref<1xi32, #tpu.memory_space<smem>>) -> (i32, i32, i32) {
    %c0_i32 = arith.constant 0 : i32
    %c0_i32_0 = arith.constant 0 : i32
    %c0_i32_1 = arith.constant 0 : i32
    return %arg0, %c0_i32, %c0_i32_0 : i32, i32, i32
  }
  func.func @transform_5(%arg0: i32, %arg1: memref<1xi32, #tpu.memory_space<smem>>) -> (i32, i32, i32) {
    %c0_i32 = arith.constant 0 : i32
    %c0_i32_0 = arith.constant 0 : i32
    %c0_i32_1 = arith.constant 0 : i32
    return %arg0, %c0_i32, %c0_i32_0 : i32, i32, i32
  }
}

</mosaic_0001>

<bundles_post_ra>
// kernel: tpu_custom_call.1
= control target key start
LH: loop header
LB: loop body
LE: loop exit
PB: predicated region body
PF: predicated region fallthrough
CT: control target
= control target key end

     0   :  { %v25_v0 = vlaneseq  ;;  %vm1064_vm0 = vcmask 523264   ;;  %v863_v12 = vmov 1.0|1.0   ;;  %s1057_s0 = inlined_call_operand.<no memory space> [shape: s32[1], index: 0, kind: input, shape index: {}]   ;;  %s1058_s1 = inlined_call_operand.vmem [shape: f32[128,64], index: 1, kind: input, shape index: {}]   ;;  %s1059_s2 = inlined_call_operand.vmem [shape: f32[128,64], index: 2, kind: input, shape index: {}]   ;;  %s1060_s3 = inlined_call_operand.vmem [shape: s32[1,1,128], index: 3, kind: input, shape index: {}]   ;;  %s1061_s4 = inlined_call_operand.vmem [shape: s32[1,1,128], index: 4, kind: input, shape index: {}]   ;;  %s1062_s5 = inlined_call_operand.vmem [shape: f32[1,1,128], index: 5, kind: input, shape index: {}]   ;;  %s1063_s6 = inlined_call_operand.hbm [shape: f32[1,1,1], index: 6, kind: output, shape index: {}]  }
   0x1   :  { %v603_v1 = vld [vmem:[%s1060_s3] ss:$0 sm:$0xff] }
   0x2   :  { %v90_v2 = vld [vmem:[%s1058_s1] sm:$0xff]  ;;  %v26_v4 = vshrl.u32 %v25_v0, 7 }
   0x3   :  { %v300_v3 = vld [vmem:[%s1059_s2] sm:$0xff]  ;;  %734 = vmatprep.mubr.msk.f32.mxu0 %vm1064_vm0, %v90_v2 }
   0x4   :  { %v612_v5 = vld [vmem:[%s1061_s4] ss:$0 sm:$0xff]  ;;  %774 = vmatprep.mubr.msk.f32.mxu1 %vm1064_vm0, %v300_v3  ;;  %v27_v6 = vadd.s32 8, %v26_v4  ;;  %vm38_vm1 = vcmp.eq.s32.totalorder %v26_v4, %v603_v1  ;;  %v28_v7 = vadd.s32 16, %v26_v4  ;;  %v29_v8 = vadd.s32 24, %v26_v4 }
   0x5   :  { %vm66_vm2 = vcmp.eq.s32.totalorder %v26_v4, %v612_v5  ;;  %v30_v9 = vadd.s32 32, %v26_v4  ;;  %v31_v10 = vadd.s32 40, %v26_v4  ;;  %v32_v11 = vadd.s32 48, %v26_v4 }
   0x6   :  { %vm39_vm3 = vcmp.eq.s32.totalorder %v27_v6, %v603_v1  ;;  %vm67_vm4 = vcmp.eq.s32.totalorder %v27_v6, %v612_v5  ;;  %vm40_vm5 = vcmp.eq.s32.totalorder %v28_v7, %v603_v1  ;;  %vm41_vm7 = vcmp.eq.s32.totalorder %v29_v8, %v603_v1 }
   0x7   :  { %vm798_vm6 = vmpackc.low %vm39_vm3, %vm38_vm1  ;;  %vm68_vm8 = vcmp.eq.s32.totalorder %v28_v7, %v612_v5  ;;  %vm69_vm9 = vcmp.eq.s32.totalorder %v29_v8, %v612_v5  ;;  %vm42_vm11 = vcmp.eq.s32.totalorder %v30_v9, %v603_v1  ;;  %vm43_vm12 = vcmp.eq.s32.totalorder %v31_v10, %v603_v1 }
   0x8   :  { %799 = vmatprep.subr.msk.bf16.mxu0 %vm798_vm6, %v863_v12  ;;  %vm814_vm10 = vmpackc.low %vm67_vm4, %vm66_vm2  ;;  %v33_v13 = vadd.s32 56, %v26_v4  ;;  %vm70_vm14 = vcmp.eq.s32.totalorder %v30_v9, %v612_v5  ;;  %vm71_vm15 = vcmp.eq.s32.totalorder %v31_v10, %v612_v5  ;;  %vm44_vm0 = vcmp.eq.s32.totalorder %v32_v11, %v603_v1 }
   0x9   :  { %815 = vmatprep.subr.msk.bf16.mxu1 %vm814_vm10, %v863_v12  ;;  %801 = vmatpush3.bf16.msk.msra.mxu0 %vm798_vm6, %v863_v12  ;;  %vm802_vm13 = vmpackc.low %vm41_vm7, %vm40_vm5  ;;  %vm72_vm6 = vcmp.eq.s32.totalorder %v32_v11, %v612_v5 }
   0xa   :  { %817 = vmatpush3.bf16.msk.msra.mxu1 %vm814_vm10, %v863_v12  ;;  %803 = vmatprep.subr.msk.bf16.mxu0 %vm802_vm13, %v863_v12  ;;  %vm818_vm1 = vmpackc.low %vm69_vm9, %vm68_vm8  ;;  %vm45_vm2 = vcmp.eq.s32.totalorder %v33_v13, %v603_v1  ;;  %vm73_vm5 = vcmp.eq.s32.totalorder %v33_v13, %v612_v5 }
   0xb   :  { %819 = vmatprep.subr.msk.bf16.mxu1 %vm818_vm1, %v863_v12  ;;  %vm806_vm3 = vmpackc.low %vm43_vm12, %vm42_vm11 }
   0xc   :  { %vm822_vm4 = vmpackc.low %vm71_vm15, %vm70_vm14 }
   0xd   :  { %805 = vmatpush3.bf16.msk.msra.mxu0 %vm802_vm13, %v863_v12  ;;  %vm810_vm7 = vmpackc.low %vm45_vm2, %vm44_vm0 }
   0xe   :  { %821 = vmatpush3.bf16.msk.msra.mxu1 %vm818_vm1, %v863_v12  ;;  %807 = vmatprep.subr.msk.bf16.mxu0 %vm806_vm3, %v863_v12 }
   0xf   :  { %823 = vmatprep.subr.msk.bf16.mxu1 %vm822_vm4, %v863_v12 }
  0x10   :  { %12 = vsyncpa [#allocation5], 0  ;;  %v91_v14 = vld [vmem:[%s1058_s1 + $0x8] sm:$0xff]  ;;  %v92_v16 = vld [vmem:[%s1058_s1 + $0x10] sm:$0xff]  ;;  %vm1065_vm0 = vcmask 523264  }
  0x11   :  { %vm826_vm10 = vmpackc.low %vm73_vm5, %vm72_vm6  ;;  %809 = vmatpush3.bf16.msk.msra.mxu0 %vm806_vm3, %v863_v12  ;;  %v301_v15 = vld [vmem:[%s1059_s2 + $0x8] sm:$0xff]  ;;  %v302_v17 = vld [vmem:[%s1059_s2 + $0x10] sm:$0xff] }
  0x12   :  { %825 = vmatpush3.bf16.msk.msra.mxu1 %vm822_vm4, %v863_v12  ;;  %811 = vmatprep.subr.msk.bf16.mxu0 %vm810_vm7, %v863_v12  ;;  %vm1066_vm8 = vmmov %vm1065_vm0  ;;  %v93_v18 = vld [vmem:[%s1058_s1 + $0x18] sm:$0xff]  ;;  %v94_v20 = vld [vmem:[%s1058_s1 + $0x20] sm:$0xff] }
  0x13   :  { %827 = vmatprep.subr.msk.bf16.mxu1 %vm826_vm10, %v863_v12  ;;  %vm1067_vm9 = vmmov %vm1065_vm0  ;;  %v303_v19 = vld [vmem:[%s1059_s2 + $0x18] sm:$0xff]  ;;  %v304_v21 = vld [vmem:[%s1059_s2 + $0x20] sm:$0xff] }
  0x14   :  { %vm1068_vm11 = vmmov %vm1065_vm0  ;;  %v95_v22 = vld [vmem:[%s1058_s1 + $0x28] sm:$0xff]  ;;  %v96_v24 = vld [vmem:[%s1058_s1 + $0x30] sm:$0xff] }
  0x15   :  { %813 = vmatpush3.bf16.msk.msra.mxu0 %vm810_vm7, %v863_v12  ;;  %vm1069_vm12 = vmmov %vm1065_vm0  ;;  %v305_v23 = vld [vmem:[%s1059_s2 + $0x28] sm:$0xff]  ;;  %v306_v25 = vld [vmem:[%s1059_s2 + $0x30] sm:$0xff] }
  0x16   :  { %829 = vmatpush3.bf16.msk.msra.mxu1 %vm826_vm10, %v863_v12  ;;  %vm1070_vm13 = vmmov %vm1065_vm0  ;;  %v97_v26 = vld [vmem:[%s1058_s1 + $0x38] sm:$0xff]  ;;  %v98_v28 = vld [vmem:[%s1058_s1 + $0x40] sm:$0xff] }
  0x17   :  { %vm1071_vm14 = vmmov %vm1065_vm0  ;;  %v307_v27 = vld [vmem:[%s1059_s2 + $0x38] sm:$0xff]  ;;  %v308_v29 = vld [vmem:[%s1059_s2 + $0x40] sm:$0xff] }
  0x18   :  { %735 = vmatmul.mubr.msk.f32.vlgmr.msra.gmra.mrb[0].mxu0 %vm1065_vm0, %v91_v14  ;;  %vm1072_vm15 = vmmov %vm1065_vm0  ;;  %v99_v30 = vld [vmem:[%s1058_s1 + $0x48] sm:$0xff]  ;;  %v100_v32 = vld [vmem:[%s1058_s1 + $0x50] sm:$0xff] }
  0x19   :  { %775 = vmatmul.mubr.msk.f32.vlgmr.msra.gmra.mrb[0].mxu1 %vm1066_vm8, %v301_v15  ;;  %737 = vmatprep.mubr.msk.f32.mxu0 %vm1067_vm9, %v92_v16  ;;  %vm1073_vm1 = vmmov %vm1065_vm0  ;;  %v309_v31 = vld [vmem:[%s1059_s2 + $0x48] sm:$0xff]  ;;  %v310_v33 = vld [vmem:[%s1059_s2 + $0x50] sm:$0xff] }
  0x1a   :  { %777 = vmatprep.mubr.msk.f32.mxu1 %vm1068_vm11, %v302_v17  ;;  %vm1074_vm3 = vmmov %vm1065_vm0  ;;  %v101_v34 = vld [vmem:[%s1058_s1 + $0x58] sm:$0xff]  ;;  %v102_v36 = vld [vmem:[%s1058_s1 + $0x60] sm:$0xff] }
  0x1b   :  { %vm1075_vm2 = vmmov %vm1065_vm0  ;;  %v311_v35 = vld [vmem:[%s1059_s2 + $0x58] sm:$0xff]  ;;  %v312_v37 = vld [vmem:[%s1059_s2 + $0x60] sm:$0xff] }
  0x1c   :  { %738 = vmatmul.mubr.msk.f32.gmra.mrb[2].mxu0 %vm1069_vm12, %v93_v18  ;;  %vm1076_vm4 = vmmov %vm1065_vm0  ;;  %v103_v38 = vld [vmem:[%s1058_s1 + $0x68] sm:$0xff]  ;;  %v104_v40 = vld [vmem:[%s1058_s1 + $0x70] sm:$0xff] }
  0x1d   :  { %778 = vmatmul.mubr.msk.f32.gmra.mrb[2].mxu1 %vm1070_vm13, %v303_v19  ;;  %740 = vmatprep.mubr.msk.f32.mxu0 %vm1071_vm14, %v94_v20  ;;  %vm1077_vm6 = vmmov %vm1065_vm0  ;;  %v313_v39 = vld [vmem:[%s1059_s2 + $0x68] sm:$0xff]  ;;  %v314_v41 = vld [vmem:[%s1059_s2 + $0x70] sm:$0xff] }
  0x1e   :  { %780 = vmatprep.mubr.msk.f32.mxu1 %vm1072_vm15, %v304_v21  ;;  %vm1078_vm5 = vmmov %vm1065_vm0  ;;  %v105_v42 = vld [vmem:[%s1058_s1 + $0x78] sm:$0xff] }
  0x1f   :  { %vm1079_vm7 = vmmov %vm1065_vm0  ;;  %v315_v43 = vld [vmem:[%s1059_s2 + $0x78] sm:$0xff] }
  0x20   :  { %741 = vmatmul.mubr.msk.f32.gmra.mrb[4].mxu0 %vm1073_vm1, %v95_v22  ;;  %vm1080_vm10 = vmmov %vm1065_vm0 }
  0x21   :  { %781 = vmatmul.mubr.msk.f32.gmra.mrb[4].mxu1 %vm1074_vm3, %v305_v23  ;;  %743 = vmatprep.mubr.msk.f32.mxu0 %vm1075_vm2, %v96_v24  ;;  %vm1081_vm8 = vmmov %vm1065_vm0 }
  0x22   :  { %783 = vmatprep.mubr.msk.f32.mxu1 %vm1076_vm4, %v306_v25  ;;  %vm1082_vm9 = vmmov %vm1065_vm0 }
  0x23   :  { %vm1083_vm11 = vmmov %vm1065_vm0 }
  0x24   :  { %744 = vmatmul.mubr.msk.f32.gmra.mrb[6].mxu0 %vm1077_vm6, %v97_v26  ;;  %vm1084_vm12 = vmmov %vm1065_vm0 }
  0x25   :  { %784 = vmatmul.mubr.msk.f32.gmra.mrb[6].mxu1 %vm1078_vm5, %v307_v27  ;;  %746 = vmatprep.mubr.msk.f32.mxu0 %vm1079_vm7, %v98_v28  ;;  %vm1085_vm13 = vmmov %vm1065_vm0 }
  0x26   :  { %786 = vmatprep.mubr.msk.f32.mxu1 %vm1080_vm10, %v308_v29  ;;  %vm1086_vm14 = vmmov %vm1065_vm0 }
  0x27   :  { %vm1087_vm15 = vmmov %vm1065_vm0 }
  0x28   :  { %747 = vmatmul.mubr.msk.f32.gmra.mrb[8].mxu0 %vm1065_vm0, %v99_v30  ;;  %vm1088_vm1 = vmmov %vm1065_vm0 }
  0x29   :  { %787 = vmatmul.mubr.msk.f32.gmra.mrb[8].mxu1 %vm1081_vm8, %v309_v31  ;;  %749 = vmatprep.mubr.msk.f32.mxu0 %vm1082_vm9, %v100_v32  ;;  %vm1089_vm3 = vmmov %vm1065_vm0  ;;  %vm587_vm8 = vcmask 0  }
  0x2a   :  { %789 = vmatprep.mubr.msk.f32.mxu1 %vm1083_vm11, %v310_v33  ;;  %vm1090_vm2 = vmmov %vm1065_vm0 }
  0x2b   :  { %vm1091_vm4 = vmmov %vm1065_vm0 }
  0x2c   :  { %750 = vmatmul.mubr.msk.f32.gmra.mrb[10].mxu0 %vm1084_vm12, %v101_v34  ;;  %vm1092_vm6 = vmmov %vm1065_vm0 }
  0x2d   :  { %790 = vmatmul.mubr.msk.f32.gmra.mrb[10].mxu1 %vm1085_vm13, %v311_v35  ;;  %752 = vmatprep.mubr.msk.f32.mxu0 %vm1086_vm14, %v102_v36  ;;  %vm1093_vm5 = vmmov %vm1065_vm0  ;;  %vm575_vm0 = vcmask 1040384  }
  0x2e   :  { %792 = vmatprep.mubr.msk.f32.mxu1 %vm1087_vm15, %v312_v37 }
  0x30   :  { %753 = vmatmul.mubr.msk.f32.gmra.mrb[12].mxu0 %vm1088_vm1, %v103_v38 }
  0x31   :  { %793 = vmatmul.mubr.msk.f32.gmra.mrb[12].mxu1 %vm1089_vm3, %v313_v39  ;;  %755 = vmatprep.mubr.msk.f32.mxu0 %vm1090_vm2, %v104_v40 }
  0x32   :  { %795 = vmatprep.mubr.msk.f32.mxu1 %vm1091_vm4, %v314_v41 }
  0x34   :  { %756 = vmatmul.mubr.msk.f32.gmra.mrb[14].mxu0 %vm1092_vm6, %v105_v42 }
  0x35   :  { %796 = vmatmul.mubr.msk.f32.gmra.mrb[14].mxu1 %vm1093_vm5, %v315_v43 }
  0xeb   :  { %v736_v44 = vpop.f32.mrb[0].mxu0 }
  0xec   :  { %v776_v45 = vpop.f32.mrb[0].mxu1  ;;  %v221_v46 = vpop.f32.mrb[1].mxu0 }
  0xed   :  { %v510_v47 = vmul.f32 %v776_v45, %v736_v44  ;;  %v430_v48 = vpop.f32.mrb[1].mxu1 }
  0xee   :  { %v509_v49 = vmul.f32 %v430_v48, %v221_v46 }
  0xef   :  { %v739_v50 = vpop.f32.mrb[2].mxu0 }
  0xf0   :  { %v525_v51 = vadd.f32 %v510_v47, %v509_v49  ;;  %v779_v52 = vpop.f32.mrb[2].mxu1  ;;  %v231_v53 = vpop.f32.mrb[3].mxu0 }
  0xf1   :  { %v512_v54 = vmul.f32 %v779_v52, %v739_v50  ;;  %v440_v55 = vpop.f32.mrb[3].mxu1 }
  0xf2   :  { %v511_v56 = vmul.f32 %v440_v55, %v231_v53 }
  0xf3   :  { %v742_v57 = vpop.f32.mrb[4].mxu0 }
  0xf4   :  { %v526_v58 = vadd.f32 %v525_v51, %v511_v56  ;;  %v782_v59 = vpop.f32.mrb[4].mxu1  ;;  %v241_v60 = vpop.f32.mrb[5].mxu0  ;;  %v546_v56 = vld [vmem:[%s1062_s5] sm:$0x1] }
  0xf5   :  { %v514_v61 = vmul.f32 %v782_v59, %v742_v57  ;;  %v450_v62 = vpop.f32.mrb[5].mxu1  ;;  %v567_v57 = vand.u32 127, %v25_v0  ;;  %v570_v59 = vstv %s1057_s0  ;;  %s865_s0 = smov [#allocation4]  }
  0xf6   :  { %v513_v63 = vmul.f32 %v450_v62, %v241_v60  ;;  %v527_v1 = vadd.f32 %v526_v58, %v512_v54  ;;  %s595_s5 = sshll.u32 %s865_s0, 4  ;;  %s596_s5 = int_to_ptr.vmem [resolvable:$true] %s595_s5 }
  0xf7   :  { %v745_v2 = vpop.f32.mrb[6].mxu0  ;;  %vm571_vm7 = vcmp.lt.s32.totalorder %v567_v57, %v570_v59  ;;  %s839_s14 = scalar_lea.vmem %s596_s5, 16  ;;  %s843_s15 = scalar_lea.vmem %s596_s5, 32 }
  0xf8   :  { %v528_v3 = vadd.f32 %v527_v1, %v513_v63  ;;  %v785_v4 = vpop.f32.mrb[6].mxu1  ;;  %v251_v5 = vpop.f32.mrb[7].mxu0  ;;  %p840_p0 = scmp.ne.s32.totalorder %s596_s5, %s839_s14  ;;  %p844_p1 = scmp.lt.s32.totalorder %s596_s5, %s596_s5 }
  0xf9   :  { %v516_v6 = vmul.f32 %v785_v4, %v745_v2  ;;  %v460_v7 = vpop.f32.mrb[7].mxu1  ;;  %p845_p2 = scmp.lt.s32.totalorder %s843_s15, %s839_s14 }
  0xfa   :  { %v515_v8 = vmul.f32 %v460_v7, %v251_v5  ;;  %v529_v9 = vadd.f32 %v528_v3, %v514_v61  ;;  %v864_v5 = vmov 0.0  }
  0xfb   :  { %v748_v10 = vpop.f32.mrb[8].mxu0  ;;  %p846_p3 = por %p845_p2, %p844_p1 }
  0xfc   :  { %v530_v11 = vadd.f32 %v529_v9, %v515_v8  ;;  %v788_v12 = vpop.f32.mrb[8].mxu1  ;;  %v261_v13 = vpop.f32.mrb[9].mxu0 }
  0xfd   :  { %v518_v14 = vmul.f32 %v788_v12, %v748_v10  ;;  %v470_v15 = vpop.f32.mrb[9].mxu1  ;;  %p847_p4 = pnand %p846_p3, %p840_p0 }
  0xfe   :  { %v517_v16 = vmul.f32 %v470_v15, %v261_v13  ;;  %v531_v17 = vadd.f32 %v530_v11, %v516_v6  ;;  %v669_v6 = vsel %vm571_vm7, 1.0, %v864_v5 }
  0xff   :  { %v751_v18 = vpop.f32.mrb[10].mxu0 }
 0x100   :  { %v532_v19 = vadd.f32 %v531_v17, %v517_v16  ;;  %v791_v20 = vpop.f32.mrb[10].mxu1  ;;  %v271_v21 = vpop.f32.mrb[11].mxu0 }
 0x101   :  { %v520_v22 = vmul.f32 %v791_v20, %v751_v18  ;;  %v480_v23 = vpop.f32.mrb[11].mxu1 }
 0x102   :  { %v519_v24 = vmul.f32 %v480_v23, %v271_v21  ;;  %v533_v25 = vadd.f32 %v532_v19, %v518_v14 }
 0x103   :  { %v754_v26 = vpop.f32.mrb[12].mxu0 }
 0x104   :  { %v534_v27 = vadd.f32 %v533_v25, %v519_v24  ;;  %v794_v28 = vpop.f32.mrb[12].mxu1  ;;  %v281_v29 = vpop.f32.mrb[13].mxu0 }
 0x105   :  { %v522_v30 = vmul.f32 %v794_v28, %v754_v26  ;;  %v490_v31 = vpop.f32.mrb[13].mxu1 }
 0x106   :  { %v521_v32 = vmul.f32 %v490_v31, %v281_v29  ;;  %v535_v33 = vadd.f32 %v534_v27, %v520_v22 }
 0x107   :  { %v757_v34 = vpop.f32.mrb[14].mxu0 }
 0x108   :  { %v536_v35 = vadd.f32 %v535_v33, %v521_v32  ;;  %v797_v36 = vpop.f32.mrb[14].mxu1  ;;  %v291_v37 = vpop.f32.mrb[15].mxu0 }
 0x109   :  { %v524_v38 = vmul.f32 %v797_v36, %v757_v34  ;;  %v500_v39 = vpop.f32.mrb[15].mxu1 }
 0x10a   :  { %v523_v40 = vmul.f32 %v500_v39, %v291_v37  ;;  %v537_v41 = vadd.f32 %v536_v35, %v522_v30 }
 0x10c   :  { %v538_v42 = vadd.f32 %v537_v41, %v523_v40 }
 0x10e   :  { %v539_v43 = vadd.f32 %v538_v42, %v524_v38 }
 0x110   :  { %v540_v44 = vrot.slane %v539_v43, 4 }
 0x112   :  { %v541_v45 = vadd.f32 %v540_v44, %v539_v43 }
 0x114   :  { %v542_v46 = vrot.slane %v541_v45, 2 }
 0x116   :  { %v543_v47 = vadd.f32 %v542_v46, %v541_v45 }
 0x118   :  { %v544_v48 = vrot.slane %v543_v47, 1 }
 0x11a   :  { %v545_v49 = vadd.f32 %v544_v48, %v543_v47 }
 0x11c   :  { %v551_v50 = vand.u32 2147483647, %v545_v49  ;;  %v548_v60 = vmax.f32 %v545_v49, 0.0  ;;  %v549_v61 = vmul.f32 %v546_v56, %v545_v49 }
 0x11e   :  { %v552_v51 = vsub.f32 0.0, %v551_v50  ;;  %v550_v3 = vsub.f32 %v548_v60, %v549_v61 }
 0x120   :  { %v553_v52 = vmul.f32 1.442695, %v552_v51 }
 0x122   :  { %835 = vpow2.f32 %v553_v52 }
 0x12c   :  { %v836_v53 = vpop.eup %835 }
 0x12d   :  { %v555_v54 = vadd.f32 1.0, %v836_v53  ;;  %v558_v55 = vmul.f32 -0.5, %v836_v53  ;;  %v561_v62 = vand.u32 2147483647, %v836_v53 }
 0x12f   :  { %837 = vlog2.f32 %v555_v54  ;;  %v559_v58 = vadd.f32 1.0, %v558_v55  ;;  %vm562_vm10 = vcmp.lt.f32.partialorder %v561_v62, 0.0004427343 }
 0x131   :  { %v560_v2 = vmul.f32 %v836_v53, %v559_v58 }
 0x139   :  { %v838_v63 = vpop.eup %837 }
 0x13a   :  { %v557_v1 = vmul.f32 0.6931472, %v838_v63 }
 0x13c   :  { %v563_v4 = vsel %vm562_vm10, %v560_v2, %v557_v1 }
 0x13d   :  { %v564_v7 = vadd.f32 %v563_v4, %v550_v3 }
 0x13f   :  { %v574_v0 = vmul.f32 %v669_v6, %v564_v7 }
 0x141   :  { %v576_v8 = vsel %vm575_vm0, %v574_v0, 0.0 }
 0x142   :  { %577 = vadd.xlane.f32.xlu0 %v576_v8 }
 0x1cf   :  { %v578_v9 = vpop.xlane.xlu0 %577 }
 0x1d0   :  { %v579_v10 = vrot.slane %v578_v9, 4 }
 0x1d2   :  { %v580_v11 = vadd.f32 %v579_v10, %v578_v9 }
 0x1d4   :  { %v581_v12 = vrot.slane %v580_v11, 2 }
 0x1d6   :  { %v582_v13 = vadd.f32 %v581_v12, %v580_v11 }
 0x1d8   :  { %v583_v14 = vrot.slane %v582_v13, 1 }
 0x1da   :  { %v584_v15 = vadd.f32 %v583_v14, %v582_v13 }
 0x1dc   :  { %830 = vpush %v584_v15 }
 0x20d   :  { %s831_s13 = spop %830 }
 0x20e   :  { %v586_v16 = vstv %s831_s13 }
 0x20f   :  { %588 = vst.msk [vmem:[#allocation4] sm:$0x1] %vm587_vm8, %v586_v16 }
 0x210   :  { %850 = shalt.err (!%p847_p4)
}
 0x211   :  { %s851_s18 = scalar_lea.hbm %s1063_s6, 16 }
 0x212   :  { %p852_p5 = scmp.ne.s32.totalorder %s1063_s6, %s851_s18  ;;  %p855_p6 = scmp.lt.u32.totalorder %s851_s18, %s1063_s6 }
 0x214   :  { %p857_p7 = pnand %p855_p6, %p852_p5 }
 0x216   :  { %860 = shalt.err (!%p857_p7)
}
 0x217   :  { %598 = dma.vmem_to_hbm [thread:$0]  %s596_s5, 16, %s1063_s6, [#allocation5]  }
 0x218   :  { %861 = dma.done.wait [#allocation5], 16  }
 0x219   :  { %862 = vsyncadd [#allocation5], 4294967280 }
 0x21a   :  { %602 = vsyncpa [#allocation5], 1 }

</bundles_post_ra>
